<compile_context>
chip_gen: v5e
topology: v5e:2x2
jax: 0.10.0
libtpu: 0.0.40
codegen_flags: <defaults>
</compile_context>

<pallas_src>
import jax
import jax.numpy as jnp
from jax.experimental import pallas as pl
from jax.experimental.pallas import tpu as pltpu


def _round_up(x, m):
    return ((x + m - 1) // m) * m


def _choose_tile_n(n128, d, m, dsize, budget_bytes=12 * 1024 * 1024):
    """Largest token tile (multiple of 128, <=1024) whose double-buffered
    x-tile + out-tile fit a VMEM budget safe on all generations."""
    per_token = 2 * (d + m) * dsize          # 2x (pipeline) * (x row + out column)
    t = budget_bytes // max(per_token, 1)
    t = (t // 128) * 128
    t = max(128, min(1024, t))
    return min(t, n128)


def _p2c_kernel(x_ref, wt_ref, o_ref):
    # x_ref : (TILE_N, D)  activation tile for one batch element
    # wt_ref: (D, M)       transposed clustering weight (VMEM-resident across grid)
    # o_ref : (M, TILE_N)  output tile: clusters x tokens (already "rearranged")
    acc = jnp.dot(x_ref[...], wt_ref[...],
                  preferred_element_type=jnp.float32)        # (TILE_N, M), MXU-natural
    # Transpose only the small (TILE_N, M) result (not the big activation) so the
    # token axis lands on lanes -> lane-dense, unmasked output stores.
    o_ref[...] = acc.T.astype(o_ref.dtype)


def p2c_linear(x, weight, H=None, W=None):
    """P2CLinear forward.  x: (B, N, D), weight: (M, D) -> (B, M, N).  H, W unused."""
    B, N, D = x.shape
    M, D_w = weight.shape
    assert D == D_w

    dsize = jnp.dtype(x.dtype).itemsize
    n128 = _round_up(N, 128)
    tile_n = _choose_tile_n(n128, D, M, dsize)
    n_pad = _round_up(N, tile_n)
    if n_pad != N:
        x = jnp.pad(x, ((0, 0), (0, n_pad - N), (0, 0)))
    grid_n = n_pad // tile_n

    # Transpose the tiny weight once in the wrapper (essentially free) so the
    # in-kernel matmul needs no transpose of the large activation tile.
    w_t = weight.T  # (D, M)

    out = pl.pallas_call(
        _p2c_kernel,
        out_shape=jax.ShapeDtypeStruct((B, M, n_pad), x.dtype),
        grid=(B, grid_n),
        in_specs=[
            # per-(batch, token-tile) activation block; batch dim squeezed away
            pl.BlockSpec((pl.Squeezed(), tile_n, D), lambda b, n: (b, n, 0)),
            # full transposed weight, constant index map -> stays VMEM-resident
            pl.BlockSpec((D, M), lambda b, n: (0, 0)),
        ],
        out_specs=pl.BlockSpec((pl.Squeezed(), M, tile_n), lambda b, n: (b, 0, n)),
        compiler_params=pltpu.CompilerParams(
            dimension_semantics=("parallel", "parallel"),
            vmem_limit_bytes=32 * 1024 * 1024,
        ),
        cost_estimate=pl.CostEstimate(
            flops=2 * B * n_pad * D * M,
            transcendentals=0,
            bytes_accessed=(B * n_pad * D + D * M + B * M * n_pad) * dsize,
        ),
    )(x, w_t)

    if n_pad != N:
        out = out[:, :, :N]
    return out


if __name__ == "__main__":
    # Small shapes consistent with the module: tokens N = H * W.
    B, H, W_sp = 2, 8, 8
    dim, num_clusters = 32, 8
    N = H * W_sp  # 64 (not a multiple of 128 -> exercises the padding path)

    key = jax.random.PRNGKey(0)
    kx, kw = jax.random.split(key)
    x = jax.random.normal(kx, (B, N, dim), dtype=jnp.float32)
    # Deterministic "Linear" weight init (bias=False in the module).
    bound = 1.0 / (dim ** 0.5)
    weight = jax.random.uniform(
        kw, (num_clusters, dim), dtype=jnp.float32, minval=-bound, maxval=bound
    )

    out = p2c_linear(x, weight, H, W_sp)
    jax.block_until_ready(out)

    # Reference: (x @ W.T) rearranged 'B N M -> B M N'.
    ref = jnp.transpose(jnp.einsum("bnd,md->bnm", x, weight), (0, 2, 1))
    assert out.shape == (B, num_clusters, N)
    assert jnp.allclose(out, ref, atol=1e-5, rtol=1e-5)

    print("KERNEL_OK")
</pallas_src>

<mosaic_0001>
module attributes {stable_mosaic.version = 11 : i64} {
  func.func @_p2c_kernel(%arg0: i32, %arg1: i32, %arg2: memref<1x128x32xf32, #tpu.memory_space<vmem>>, %arg3: memref<32x8xf32, #tpu.memory_space<vmem>>, %arg4: memref<1x8x128xf32, #tpu.memory_space<vmem>>) attributes {dimension_semantics = [#tpu.dimension_semantics<parallel>, #tpu.dimension_semantics<parallel>], iteration_bounds = array<i64: 2, 1>, scalar_prefetch = 0 : i64, scratch_operands = 0 : i64, tpu.core_type = #tpu.core_type<tc>, window_params = [{transform_indices = @transform_0, window_bounds = array<i64: 1, 128, 32>}, {pipeline_mode = #tpu.pipeline_mode<synchronous>, transform_indices = @transform_1, window_bounds = array<i64: 32, 8>}, {transform_indices = @transform_2, window_bounds = array<i64: 1, 8, 128>}]} {
    %c0 = arith.constant 0 : index
    %c0_0 = arith.constant 0 : index
    %c0_1 = arith.constant 0 : index
    %0 = vector.load %arg2[%c0, %c0_0, %c0_1] : memref<1x128x32xf32, #tpu.memory_space<vmem>>, vector<1x128x32xf32>
    %1 = vector.shape_cast %0 : vector<1x128x32xf32> to vector<128x32xf32>
    %c0_2 = arith.constant 0 : index
    %c0_3 = arith.constant 0 : index
    %2 = vector.load %arg3[%c0_2, %c0_3] : memref<32x8xf32, #tpu.memory_space<vmem>>, vector<32x8xf32>
    %cst = arith.constant dense<0.000000e+00> : vector<128x8xf32>
    %3 = tpu.matmul %1, %2, %cst {dimension_numbers = #tpu.dot_dimension_numbers<[1], [0], [0], [1], [0, 0, 1, 1], [], []>} : vector<128x32xf32>, vector<32x8xf32>, vector<128x8xf32> -> vector<128x8xf32>
    %4 = tpu.transpose %3, [1, 0] : vector<128x8xf32> -> vector<8x128xf32>
    %c0_4 = arith.constant 0 : index
    %c0_5 = arith.constant 0 : index
    %c0_6 = arith.constant 0 : index
    %5 = vector.load %arg4[%c0_4, %c0_5, %c0_6] : memref<1x8x128xf32, #tpu.memory_space<vmem>>, vector<1x8x128xf32>
    %6 = vector.shape_cast %5 : vector<1x8x128xf32> to vector<8x128xf32>
    %7 = vector.shape_cast %4 : vector<8x128xf32> to vector<1x8x128xf32>
    tpu.vector_store %arg4[%c0_4, %c0_5, %c0_6], %7 {strides = array<i32>} : memref<1x8x128xf32, #tpu.memory_space<vmem>>, vector<1x8x128xf32>,
    return
  }
  func.func @transform_0(%arg0: i32, %arg1: i32) -> (i32, i32, i32) {
    %c0_i32 = arith.constant 0 : i32
    %c0_i32_0 = arith.constant 0 : i32
    return %arg0, %arg1, %c0_i32 : i32, i32, i32
  }
  func.func @transform_1(%arg0: i32, %arg1: i32) -> (i32, i32) {
    %c0_i32 = arith.constant 0 : i32
    %c0_i32_0 = arith.constant 0 : i32
    %c0_i32_1 = arith.constant 0 : i32
    return %c0_i32, %c0_i32_0 : i32, i32
  }
  func.func @transform_2(%arg0: i32, %arg1: i32) -> (i32, i32, i32) {
    %c0_i32 = arith.constant 0 : i32
    %c0_i32_0 = arith.constant 0 : i32
    return %arg0, %c0_i32, %arg1 : i32, i32, i32
  }
}

</mosaic_0001>

<bundles_post_ra>
// kernel: tpu_custom_call.1
= control target key start
LH: loop header
LB: loop body
LE: loop exit
PB: predicated region body
PF: predicated region fallthrough
CT: control target
= control target key end

     0   :  { %7 = vsyncpa [#allocation3], 0  ;;  %s764_s0 = inlined_call_operand.vmem [shape: f32[2,128,32], index: 0, kind: input, shape index: {}]   ;;  %s765_s1 = inlined_call_operand.vmem [shape: f32[32,8], index: 1, kind: input, shape index: {}]   ;;  %s766_s2 = inlined_call_operand.hbm [shape: f32[2,8,128], index: 2, kind: output, shape index: {}]  }
   0x1   :  { %9 = vsyncpa [#allocation3 + $0x1], 0  ;;  %s621_s9 = smov 0   ;;  %s623_s10 = smov 0  }
   0x2   :  { %s625_s11 = smov 0   ;;  %s627_s12 = smov 0  }
   0x3   :  { %s629_s13 = smov 0   ;;  %s631_s14 = smov 0  }
   0x4 LB: > { %s430_s15 = sadd.s32 4294967295, %s604_s14   ;;  %s431_s16 = sadd.s32 4294967294, %s604_s14   ;;  %s604_s14 = sphi %s631_s14, %s15_s14   ;;  %s600_s13 = sphi %s629_s13, %s773_s13   ;;  %s596_s12 = sphi %s627_s12, %s772_s12   ;;  %s592_s11 = sphi %s625_s11, %s771_s11   ;;  %s588_s10 = sphi %s623_s10, %s770_s10   ;;  %s584_s9 = sphi %s621_s9, %s769_s9  }
   0x5   : > { %s27_s17 = sadd.s32 1, %s600_s13  ;;  %s85_s18 = sadd.s32 1, %s592_s11 }
   0x6   : > { %p29_p0 = scmp.ge.s32.totalorder %s27_s17, 2  ;;  %p95_p1 = scmp.ne.s32.totalorder %s592_s11, %s588_s10 }
   0x7   : > { %p96_p2 = scmp.eq.s32.totalorder %s430_s15, 1  ;;  %p101_p3 = scmp.ne.s32.totalorder %s588_s10, %s584_s9 }
   0x8   : > { %s775_s17 = smov (%p29_p0, %s27_s17), 0  ;;  %p102_p5 = scmp.eq.s32.totalorder %s431_s16, 1 }
   0x9   : > { %p661_p4 = por %p96_p2, %p95_p1  ;;  %s80_s20 = ssub.s32 %s600_s13, %s775_s17 }
   0xa   : > { %p434_p6 = scmp.ge.s32.totalorder %s604_s14, 1  ;;  %p83_p7 = scmp.eq.s32.totalorder %s80_s20, 0 }
   0xb   : > { %p668_p8 = por %p102_p5, %p101_p3  ;;  %p136_p9 = scmp.lt.s32.totalorder %s604_s14, 3 }
   0xc   : > { %s674_s22 = scalar_select %p83_p7, %s592_s11, %s85_s18  }
   0xd   : > { %p137_p10 = pnand %p434_p6, %p136_p9 }
   0xe   : > { %p163_p11 = scmp.lt.s32.totalorder (!%p137_p10), %s596_s12, 1  ;;  %s159_s8 = sand.u32 (!%p137_p10), 1, %s588_s10  }
   0xf   : > { %140 = sbr.rel (%p137_p10) target bundleno = 322 (0x142), region = 28  ;;  %s435_s15 = sshll.u32 (!%p137_p10), %s159_s8, 3 }
  0x10   : > { %s455_s16 = sshll.u32 (!%p137_p10), %s596_s12, 3  ;;  %s161_s24 = scalar_lea.vmem (!%p137_p10), [#allocation2], %s435_s15 }
  0x11   : > { %s351_s23 = scalar_lea.hbm (!%p137_p10), %s766_s2, %s455_s16  ;;  %s353_s25 = sshll.u32 (!%p137_p10), %s161_s24, 4  ;;  %s354_s25 = int_to_ptr.vmem [resolvable:$true] %s353_s25 }
  0x12   : > { %s355_s26 = sshll.u32 (!%p137_p10), %s351_s23, 4  ;;  %s340_s27 = scalar_lea.sflag (!%p137_p10), [#allocation3], %s159_s8  ;;  %s356_s26 = int_to_ptr.hbm [resolvable:$true] %s355_s26 }
  0x13   : > { %s540_s28 = sshra.s32 (!%p137_p10), %s356_s26, 4  ;;  %s546_s3 = scalar_lea.hbm (!%p137_p10), %s766_s2, 16  ;;  %s541_s28 = int_to_ptr.hbm [resolvable:$true] %s540_s28 }
  0x14   : > { %v191_v0 = vld [vmem:[%s765_s1 + $0x18] sm:$0xff]  ;;  %v190_v1 = vld [vmem:[%s765_s1 + $0x10] sm:$0xff]  ;;  %v189_v2 = vld [vmem:[%s765_s1 + $0x8] sm:$0xff]  ;;  %s164_s29 = scalar_select %p163_p11, %s596_s12, 1  ;;  %vm192_vm0 = vcmask 261120  }
  0x15   : > { %253 = vmatpush.msra.mxu0 %v191_v0  ;;  %459 = vmatpush.msra.mxu1 %v191_v0  ;;  %v188_v3 = vld [vmem:[%s765_s1] sm:$0xff]  ;;  %p547_p1 = scmp.lt.s32.totalorder %s541_s28, %s766_s2 }
  0x16   : > { %460 = vmatpush.msra.mxu2 %v191_v0  ;;  %461 = vmatpush.msra.mxu3 %v191_v0  ;;  %s458_s4 = sshll.u32 %s164_s29, 7  ;;  %s542_s29 = scalar_lea.hbm %s541_s28, 8 }
  0x17   : > { %254 = vmatpush.msra.mxu0 %v190_v1  ;;  %462 = vmatpush.msra.mxu1 %v190_v1  ;;  %s693_s7 = scalar_lea.vmem %s764_s0, %s458_s4  ;;  %p543_p12 = scmp.ne.s32.totalorder %s541_s28, %s542_s29 }
  0x18   : > { %463 = vmatpush.msra.mxu2 %v190_v1  ;;  %464 = vmatpush.msra.mxu3 %v190_v1  ;;  %v172_v4 = vld [vmem:[%s693_s7] sm:$0xff]  ;;  %v173_v8 = vld [vmem:[%s693_s7 + $0x8] sm:$0xff]  ;;  %v174_v12 = vld [vmem:[%s693_s7 + $0x10] sm:$0xff]  ;;  %p548_p2 = scmp.lt.s32.totalorder %s546_s3, %s542_s29 }
  0x19   : > { %255 = vmatpush.msra.mxu0 %v189_v2  ;;  %465 = vmatpush.msra.mxu1 %v189_v2  ;;  %v176_v5 = vld [vmem:[%s693_s7 + $0x20] sm:$0xff]  ;;  %v177_v9 = vld [vmem:[%s693_s7 + $0x28] sm:$0xff]  ;;  %v178_v13 = vld [vmem:[%s693_s7 + $0x30] sm:$0xff]  ;;  %p544_p13 = pnand %p543_p12, %p661_p4 }
  0x1a   : > { %466 = vmatpush.msra.mxu2 %v189_v2  ;;  %467 = vmatpush.msra.mxu3 %v189_v2  ;;  %v180_v6 = vld [vmem:[%s693_s7 + $0x40] sm:$0xff]  ;;  %v181_v10 = vld [vmem:[%s693_s7 + $0x48] sm:$0xff]  ;;  %v182_v14 = vld [vmem:[%s693_s7 + $0x50] sm:$0xff]  ;;  %p549_p3 = por %p548_p2, %p547_p1 }
  0x1b   : > { %256 = vmatpush.msra.mxu0 %v188_v3  ;;  %468 = vmatpush.msra.mxu1 %v188_v3  ;;  %v184_v7 = vld [vmem:[%s693_s7 + $0x60] sm:$0xff]  ;;  %v185_v11 = vld [vmem:[%s693_s7 + $0x68] sm:$0xff]  ;;  %v186_v15 = vld [vmem:[%s693_s7 + $0x70] sm:$0xff]  ;;  %p545_p0 = pneg %p544_p13 }
  0x1c   : > { %438 = vmatmul.msk.f32.vlgmr.msra.gmra.mxu0 %vm192_vm0, %v172_v4  ;;  %442 = vmatmul.msk.f32.vlgmr.msra.gmra.mxu1 %vm192_vm0, %v176_v5  ;;  %v175_v16 = vld [vmem:[%s693_s7 + $0x18] sm:$0xff] }
  0x1d   : > { %469 = vmatpush.msra.mxu2 %v188_v3  ;;  %470 = vmatpush.msra.mxu3 %v188_v3  ;;  %v179_v17 = vld [vmem:[%s693_s7 + $0x38] sm:$0xff]  ;;  %p550_p5 = pnand %p549_p3, %p545_p0 }
  0x1e   : > { %446 = vmatmul.msk.f32.vlgmr.msra.gmra.mxu2 %vm192_vm0, %v180_v6  ;;  %450 = vmatmul.msk.f32.vlgmr.msra.gmra.mxu3 %vm192_vm0, %v184_v7  ;;  %v183_v18 = vld [vmem:[%s693_s7 + $0x58] sm:$0xff] }
  0x1f   : > { %v187_v19 = vld [vmem:[%s693_s7 + $0x78] sm:$0xff] }
  0x24   : > { %439 = vmatmul.msk.f32.gmra.mxu0 %vm192_vm0, %v173_v8  ;;  %443 = vmatmul.msk.f32.gmra.mxu1 %vm192_vm0, %v177_v9 }
  0x26   : > { %447 = vmatmul.msk.f32.gmra.mxu2 %vm192_vm0, %v181_v10  ;;  %451 = vmatmul.msk.f32.gmra.mxu3 %vm192_vm0, %v185_v11 }
  0x2c   : > { %440 = vmatmul.msk.f32.gmra.mxu0 %vm192_vm0, %v174_v12  ;;  %444 = vmatmul.msk.f32.gmra.mxu1 %vm192_vm0, %v178_v13 }
  0x2e   : > { %448 = vmatmul.msk.f32.gmra.mxu2 %vm192_vm0, %v182_v14  ;;  %452 = vmatmul.msk.f32.gmra.mxu3 %vm192_vm0, %v186_v15 }
  0x34   : > { %441 = vmatmul.msk.f32.gmra.mxu0 %vm192_vm0, %v175_v16  ;;  %445 = vmatmul.msk.f32.gmra.mxu1 %vm192_vm0, %v179_v17 }
  0x36   : > { %449 = vmatmul.msk.f32.gmra.mxu2 %vm192_vm0, %v183_v18  ;;  %453 = vmatmul.msk.f32.gmra.mxu3 %vm192_vm0, %v187_v19 }
  0x99   : > { %v258_v20 = vpop.f32.mrf.mxu0  ;;  %v270_v24 = vpop.f32.mrf.mxu1 }
  0x9a   : > { %306 = vxpose.xlu0.b32.start [1/16] (narrow) %v258_v20, 8 }
  0xa1   : > { %v261_v21 = vpop.f32.mrf.mxu0  ;;  %v273_v25 = vpop.f32.mrf.mxu1 }
  0xa2   : > { %307 = vxpose.xlu0.b32.cont [2/16] (narrow) %v261_v21, 8  ;;  %v282_v28 = vpop.f32.mrf.mxu2  ;;  %v294_v32 = vpop.f32.mrf.mxu3 }
  0xa9   : > { %v264_v22 = vpop.f32.mrf.mxu0  ;;  %v276_v26 = vpop.f32.mrf.mxu1 }
  0xaa   : > { %308 = vxpose.xlu0.b32.cont [3/16] (narrow) %v264_v22, 8  ;;  %v285_v29 = vpop.f32.mrf.mxu2  ;;  %v297_v33 = vpop.f32.mrf.mxu3 }
  0xb1   : > { %v267_v23 = vpop.f32.mrf.mxu0  ;;  %v279_v27 = vpop.f32.mrf.mxu1 }
  0xb2   : > { %309 = vxpose.xlu0.b32.cont [4/16] (narrow) %v267_v23, 8  ;;  %v288_v30 = vpop.f32.mrf.mxu2  ;;  %v300_v34 = vpop.f32.mrf.mxu3 }
  0xba   : > { %310 = vxpose.xlu0.b32.cont [5/16] (narrow) %v270_v24, 8  ;;  %v291_v31 = vpop.f32.mrf.mxu2  ;;  %v303_v35 = vpop.f32.mrf.mxu3 }
  0xc2   : > { %311 = vxpose.xlu0.b32.cont [6/16] (narrow) %v273_v25, 8 }
  0xca   : > { %312 = vxpose.xlu0.b32.cont [7/16] (narrow) %v276_v26, 8 }
  0xd2   : > { %313 = vxpose.xlu0.b32.cont [8/16] (narrow) %v279_v27, 8 }
  0xda   : > { %314 = vxpose.xlu0.b32.cont [9/16] (narrow) %v282_v28, 8 }
  0xe2   : > { %315 = vxpose.xlu0.b32.cont [10/16] (narrow) %v285_v29, 8 }
  0xea   : > { %316 = vxpose.xlu0.b32.cont [11/16] (narrow) %v288_v30, 8 }
  0xf2   : > { %317 = vxpose.xlu0.b32.cont [12/16] (narrow) %v291_v31, 8 }
  0xfa   : > { %318 = vxpose.xlu0.b32.cont [13/16] (narrow) %v294_v32, 8 }
 0x102   : > { %319 = vxpose.xlu0.b32.cont [14/16] (narrow) %v297_v33, 8 }
 0x10a   : > { %320 = vxpose.xlu0.b32.cont [15/16] (narrow) %v300_v34, 8 }
 0x112   : > { %321 = vxpose.xlu0.b32.end [16/16] (narrow) %v303_v35, 8 }
 0x13e   : > { %v322_v36 = vpop.trf.xlu0 }
 0x13f   : > { %338 = vst [vmem:[%s161_s24] sm:$0xff] %v322_v36 }
 0x140   : > { %553 = shalt.err (!%p550_p5)
}
 0x141   : > { %471 = dma.vmem_to_hbm [thread:$0]  (%p661_p4), %s354_s25, 128, %s356_s26, %s340_s27  }
 0x142 PF: > { %p477_p6 = scmp.ge.s32.totalorder %s604_s14, 2  ;;  %s367_s6 = sand.u32 1, %s584_s9  }
 0x143   : > { %s368_s7 = scalar_lea.sflag [#allocation3], %s367_s6 }
 0x144   : > { %p474_p7 = pnand %p477_p6, %p668_p8 }
 0x146   : > { %p475_p9 = pneg %p474_p7 }
 0x148   : > { %579 = dma.done.wait (%p475_p9), %s368_s7, 128  }
 0x149   : > { %581 = vsyncadd (%p475_p9), %s368_s7, 4294967168  ;;  %s15_s14 = sadd.s32 1, %s604_s14   ;;  %s769_s9 = smov %s588_s10 }
 0x14a   : > { %p12_p10 = scmp.ge.s32.totalorder %s15_s14, 4   ;;  %s770_s10 = smov %s592_s11 }
 0x14b   : > { %s771_s11 = smov %s674_s22  ;;  %s772_s12 = smov %s600_s13 }
 0x14c   : > { %s773_s13 = smov %s775_s17  ;;  %14 = sbr.rel (!%p12_p10) target bundleno = 4 (0x4), region = 63 }
 0x151   :  { %374 = vsyncpa [#allocation3], 1 }
 0x152   :  { %376 = vsyncpa [#allocation3 + $0x1], 1 }

</bundles_post_ra>
